<compile_context>
chip_gen: v5e
topology: v5e:2x2
jax: 0.10.0
libtpu: 0.0.40
codegen_flags: <defaults>
</compile_context>

<pallas_src>
import numpy as np
import jax
import jax.numpy as jnp
from jax import lax
from jax.experimental import pallas as pl
from jax.experimental.pallas import tpu as pltpu


def _pool_out_size(L, k, s, p):
    """PyTorch pooling output size, ceil_mode=True."""
    out = -(-(L + 2 * p - k) // s) + 1          # ceil((L + 2p - k) / s) + 1
    if (out - 1) * s >= L + p:                  # last window must start inside image+left pad
        out -= 1
    return out


def _avgpool_sep_kernel(cs_ref, rs_ref, x_ref, o_ref):
    # cs_ref: (W, W_out)          column selector^T, scaled by 1/col_count (resident)
    # rs_ref: (H_out, H)  f32     row selector, scaled by 1/row_count      (resident)
    # x_ref : (tile_nc, H, W)     input channel tile
    # o_ref : (tile_nc, H_out, W_out)
    tnc, _, W = x_ref.shape
    _, H_out, W_out = o_ref.shape
    H = x_ref.shape[1]

    x = x_ref[...]                                            # (tnc, H, W)

    # Column pooling: (tnc, H, W) x (tnc, W, W_out) -> (tnc, H, W_out), f32 acc on MXU.
    cs_b = jnp.broadcast_to(cs_ref[...], (tnc, W, W_out))
    t = lax.dot_general(x, cs_b, (((2,), (1,)), ((0,), (0,))),
                        preferred_element_type=jnp.float32)   # einsum('nhw,nwj->nhj')

    # Row pooling: (tnc, H_out, H) x (tnc, H, W_out) -> (tnc, H_out, W_out).
    rs_b = jnp.broadcast_to(rs_ref[...], (tnc, H_out, H))
    y = lax.dot_general(rs_b, t, (((2,), (1,)), ((0,), (0,))),
                        preferred_element_type=jnp.float32)   # einsum('nih,nhj->nij')

    o_ref[...] = y.astype(o_ref.dtype)


def pz_pool2d(x, kernel_size, stride, padding=0):
    """Equivalent of nn.AvgPool2d(kernel_size, stride, padding,
    ceil_mode=True, count_include_pad=False) applied to NCHW input."""
    N, C, H, W = x.shape
    kh, kw = (kernel_size, kernel_size) if isinstance(kernel_size, int) else kernel_size
    sh, sw = (stride, stride) if isinstance(stride, int) else stride
    ph, pw = (padding, padding) if isinstance(padding, int) else padding

    H_out = _pool_out_size(H, kh, sh, ph)
    W_out = _pool_out_size(W, kw, sw, pw)
    NC = N * C

    # MXU has no integer path on v7x; pool in f32 if a non-float sneaks in
    # (PyTorch's AvgPool2d only accepts floating inputs anyway).
    if not jnp.issubdtype(x.dtype, jnp.floating):
        x = x.astype(jnp.float32)
    dt = x.dtype
    itemsize = jnp.dtype(dt).itemsize

    # --- host-side separable selectors (static, a few KB) ---------------------
    r = np.arange(H)
    i = np.arange(H_out)
    row_sel = ((r[None, :] >= i[:, None] * sh - ph) &
               (r[None, :] < i[:, None] * sh - ph + kh))          # (H_out, H) 0/1
    row_cnt = np.maximum(row_sel.sum(1), 1)

    c = np.arange(W)
    j = np.arange(W_out)
    col_sel = ((c[None, :] >= j[:, None] * sw - pw) &
               (c[None, :] < j[:, None] * sw - pw + kw))          # (W_out, W) 0/1
    col_cnt = np.maximum(col_sel.sum(1), 1)

    # Divisor factors exactly: 1/count(i,j) = (1/row_cnt[i]) * (1/col_cnt[j]).
    rs_np = (row_sel.astype(np.float64) / row_cnt[:, None]).astype(np.float32)   # (H_out, H)
    cs_np = (col_sel.astype(np.float64) / col_cnt[:, None]).T.astype(np.float32) # (W, W_out)

    rs_d = jnp.asarray(rs_np)                 # f32 (second matmul runs in f32)
    cs_d = jnp.asarray(cs_np).astype(dt)      # matches x dtype for the first MXU matmul

    # --- NC-major layout: free reshapes, no HBM transposes, no pad copy -------
    x3 = x.reshape(NC, H, W)

    # --- generation-aware tile / VMEM sizing ----------------------------------
    try:
        vmem_phys = int(pltpu.get_tpu_info().vmem_capacity_bytes)
    except Exception:
        vmem_phys = 64 * 1024 * 1024          # conservative (v7x) fallback
    vmem_limit = max(16 * 1024 * 1024,
                     min(int(0.75 * vmem_phys), 96 * 1024 * 1024))
    budget = vmem_limit // 3                  # headroom for compiler scratch / intermediates

    per_ch = (2 * (H * W + H_out * W_out) * itemsize            # double-buffered in + out
              + 4 * (H * W_out + W * W_out + H_out * H + H_out * W_out))  # f32 intermediates
    tile_nc = int(max(1, min(NC, 128, budget // max(per_ch, 1))))
    # Keep >= 2 grid steps so the parallel channel axis can shard across
    # v7x's two TensorCores.
    if NC >= 2 and tile_nc >= NC:
        tile_nc = (NC + 1) // 2
    grid = (pl.cdiv(NC, tile_nc),)

    out = pl.pallas_call(
        _avgpool_sep_kernel,
        out_shape=jax.ShapeDtypeStruct((NC, H_out, W_out), dt),
        grid=grid,
        in_specs=[
            pl.BlockSpec((W, W_out), lambda n: (0, 0)),          # resident col selector
            pl.BlockSpec((H_out, H), lambda n: (0, 0)),          # resident row selector
            pl.BlockSpec((tile_nc, H, W), lambda n: (n, 0, 0)),  # channel tile of x
        ],
        out_specs=pl.BlockSpec((tile_nc, H_out, W_out), lambda n: (n, 0, 0)),
        compiler_params=pltpu.CompilerParams(
            dimension_semantics=("parallel",),
            vmem_limit_bytes=vmem_limit),
    )(cs_d, rs_d, x3)

    return out.reshape(N, C, H_out, W_out)


def _ref_avgpool(x, kh, kw, sh, sw, ph, pw):
    """NumPy reference matching PyTorch AvgPool2d(ceil_mode=True,
    count_include_pad=False)."""
    N, C, H, W = x.shape
    H_out = _pool_out_size(H, kh, sh, ph)
    W_out = _pool_out_size(W, kw, sw, pw)
    out = np.zeros((N, C, H_out, W_out), np.float32)
    for i in range(H_out):
        for j in range(W_out):
            h0 = i * sh - ph
            w0 = j * sw - pw
            hs, ws = max(h0, 0), max(w0, 0)
            he, we = min(h0 + kh, H), min(w0 + kw, W)
            cnt = max((he - hs) * (we - ws), 1)
            out[:, :, i, j] = x[:, :, hs:he, ws:we].sum(axis=(2, 3)) / cnt
    return out


if __name__ == "__main__":
    key = jax.random.PRNGKey(0)
    N, C, H, W = 2, 4, 16, 16
    kernel_size, stride, padding = 3, 2, 1

    x = jax.random.normal(key, (N, C, H, W), dtype=jnp.float32)

    y = pz_pool2d(x, kernel_size, stride, padding)
    y = jax.block_until_ready(y)

    y_ref = _ref_avgpool(np.asarray(x), kernel_size, kernel_size,
                         stride, stride, padding, padding)
    np.testing.assert_allclose(np.asarray(y), y_ref, rtol=1e-4, atol=1e-4)

    print("KERNEL_OK")
</pallas_src>

<mosaic_0001>
module attributes {stable_mosaic.version = 11 : i64} {
  func.func @_avgpool_sep_kernel(%arg0: i32, %arg1: memref<16x9xf32, #tpu.memory_space<vmem>>, %arg2: memref<9x16xf32, #tpu.memory_space<vmem>>, %arg3: memref<4x16x16xf32, #tpu.memory_space<vmem>>, %arg4: memref<4x9x9xf32, #tpu.memory_space<vmem>>) attributes {dimension_semantics = [#tpu.dimension_semantics<parallel>], iteration_bounds = array<i64: 2>, scalar_prefetch = 0 : i64, scratch_operands = 0 : i64, tpu.core_type = #tpu.core_type<tc>, window_params = [{pipeline_mode = #tpu.pipeline_mode<synchronous>, transform_indices = @transform_0, window_bounds = array<i64: 16, 9>}, {pipeline_mode = #tpu.pipeline_mode<synchronous>, transform_indices = @transform_1, window_bounds = array<i64: 9, 16>}, {transform_indices = @transform_2, window_bounds = array<i64: 4, 16, 16>}, {transform_indices = @transform_3, window_bounds = array<i64: 4, 9, 9>}]} {
    %c0 = arith.constant 0 : index
    %c0_0 = arith.constant 0 : index
    %c0_1 = arith.constant 0 : index
    %0 = vector.load %arg3[%c0, %c0_0, %c0_1] : memref<4x16x16xf32, #tpu.memory_space<vmem>>, vector<4x16x16xf32>
    %c0_2 = arith.constant 0 : index
    %c0_3 = arith.constant 0 : index
    %1 = vector.load %arg1[%c0_2, %c0_3] : memref<16x9xf32, #tpu.memory_space<vmem>>, vector<16x9xf32>
    %2 = vector.shape_cast %1 : vector<16x9xf32> to vector<1x16x9xf32>
    %3 = vector.broadcast %2 : vector<1x16x9xf32> to vector<4x16x9xf32>
    %cst = arith.constant dense<0.000000e+00> : vector<4x16x9xf32>
    %4 = tpu.matmul %0, %3, %cst {dimension_numbers = #tpu.dot_dimension_numbers<[2], [1], [1], [2], [0, 0, 0, 1, 1, 2], [0], [0]>} : vector<4x16x16xf32>, vector<4x16x9xf32>, vector<4x16x9xf32> -> vector<4x16x9xf32>
    %c0_4 = arith.constant 0 : index
    %c0_5 = arith.constant 0 : index
    %5 = vector.load %arg2[%c0_4, %c0_5] : memref<9x16xf32, #tpu.memory_space<vmem>>, vector<9x16xf32>
    %6 = vector.shape_cast %5 : vector<9x16xf32> to vector<1x9x16xf32>
    %7 = vector.broadcast %6 : vector<1x9x16xf32> to vector<4x9x16xf32>
    %cst_6 = arith.constant dense<0.000000e+00> : vector<4x9x9xf32>
    %8 = tpu.matmul %7, %4, %cst_6 {dimension_numbers = #tpu.dot_dimension_numbers<[2], [1], [1], [2], [0, 0, 0, 1, 1, 2], [0], [0]>} : vector<4x9x16xf32>, vector<4x16x9xf32>, vector<4x9x9xf32> -> vector<4x9x9xf32>
    %c0_7 = arith.constant 0 : index
    %c0_8 = arith.constant 0 : index
    %c0_9 = arith.constant 0 : index
    %9 = vector.load %arg4[%c0_7, %c0_8, %c0_9] : memref<4x9x9xf32, #tpu.memory_space<vmem>>, vector<4x9x9xf32>
    tpu.vector_store %arg4[%c0_7, %c0_8, %c0_9], %8 {strides = array<i32>} : memref<4x9x9xf32, #tpu.memory_space<vmem>>, vector<4x9x9xf32>,
    return
  }
  func.func @transform_0(%arg0: i32) -> (i32, i32) {
    %c0_i32 = arith.constant 0 : i32
    %c0_i32_0 = arith.constant 0 : i32
    %c0_i32_1 = arith.constant 0 : i32
    return %c0_i32, %c0_i32_0 : i32, i32
  }
  func.func @transform_1(%arg0: i32) -> (i32, i32) {
    %c0_i32 = arith.constant 0 : i32
    %c0_i32_0 = arith.constant 0 : i32
    %c0_i32_1 = arith.constant 0 : i32
    return %c0_i32, %c0_i32_0 : i32, i32
  }
  func.func @transform_2(%arg0: i32) -> (i32, i32, i32) {
    %c0_i32 = arith.constant 0 : i32
    %c0_i32_0 = arith.constant 0 : i32
    %c0_i32_1 = arith.constant 0 : i32
    return %arg0, %c0_i32, %c0_i32_0 : i32, i32, i32
  }
  func.func @transform_3(%arg0: i32) -> (i32, i32, i32) {
    %c0_i32 = arith.constant 0 : i32
    %c0_i32_0 = arith.constant 0 : i32
    %c0_i32_1 = arith.constant 0 : i32
    return %arg0, %c0_i32, %c0_i32_0 : i32, i32, i32
  }
}

</mosaic_0001>

<bundles_post_ra>
// kernel: tpu_custom_call.1
= control target key start
LH: loop header
LB: loop body
LE: loop exit
PB: predicated region body
PF: predicated region fallthrough
CT: control target
= control target key end

     0   :  { %8 = vsyncpa [#allocation3], 0  ;;  %s950_s0 = inlined_call_operand.hbm [shape: f32[16,9], index: 0, kind: input, shape index: {}]   ;;  %s951_s1 = inlined_call_operand.hbm [shape: f32[9,16], index: 1, kind: input, shape index: {}]   ;;  %s952_s2 = inlined_call_operand.hbm [shape: f32[8,16,16], index: 2, kind: input, shape index: {}]   ;;  %s953_s3 = inlined_call_operand.vmem [shape: f32[8,9,9], index: 3, kind: output, shape index: {}]  }
   0x1   :  { %9 = vsyncpa [#allocation5], 0  ;;  %s812_s12 = smov 0   ;;  %s814_s13 = smov 0  }
   0x2   :  { %s816_s14 = smov 0   ;;  %s818_s15 = smov 0  }
   0x3 LB: > { %s831_s16 = sadd.s32 4294967295, %s786_s15   ;;  %p77_p0 = scmp.ne.s32.totalorder %s778_s13, %s774_s12  ;;  %s786_s15 = sphi %s818_s15, %s960_s15   ;;  %s782_s14 = sphi %s816_s14, %s959_s14   ;;  %s778_s13 = sphi %s814_s13, %s958_s13   ;;  %s774_s12 = sphi %s812_s12, %s957_s12  }
   0x4   : > { %p78_p1 = scmp.eq.s32.totalorder %s831_s16, 0  ;;  %p556_p2 = scmp.ge.s32.totalorder %s786_s15, 1 }
   0x5   : > { %p114_p3 = scmp.lt.s32.totalorder %s786_s15, 3  ;;  %s125_s20 = sshll.u32 %s950_s0, 4  ;;  %s126_s20 = int_to_ptr.hbm [resolvable:$true] %s125_s20 }
   0x6   : > { %p839_p4 = por %p78_p1, %p77_p0  ;;  %s788_s22 = smov [#allocation2]  }
   0x7   : > { %p846_p5 = pnand %p556_p2, %p114_p3  ;;  %s127_s23 = sshll.u32 %s788_s22, 4  ;;  %s128_s23 = int_to_ptr.vmem [resolvable:$true] %s127_s23 }
   0x8   : > { %s139_s26 = sshll.u32 %s951_s1, 4  ;;  %s789_s27 = smov 128   ;;  %s140_s26 = int_to_ptr.hbm [resolvable:$true] %s139_s26 }
   0x9   : > { %p602_p6 = pneg %p846_p5  ;;  %s790_s28 = smov 8  }
   0xa   : > { %s791_s29 = smov [#allocation4]   ;;  %s864_s4 = sadd.s32 1, %s786_s15  }
   0xb   : > { %p603_p7 = pnand %p602_p6, %p78_p1  ;;  %s141_s30 = sshll.u32 %s791_s29, 4  ;;  %s142_s30 = int_to_ptr.vmem [resolvable:$true] %s141_s30 }
   0xc   : > { %s64_s5 = sadd.s32 1, %s782_s14  ;;  %s61_s6 = ssub.s32 %s786_s15, %s864_s4 }
   0xd   : > { %605 = dma.hbm_to_vmem [thread:$0]  (!%p603_p7), %s126_s20, 256, %s128_s23, [#allocation3], %s789_s27, %s789_s27, %s790_s28  }
   0xe   : > { %608 = dma.hbm_to_vmem [thread:$0]  (!%p603_p7), %s140_s26, 256, %s142_s30, [#allocation5], %s789_s27, %s789_s27, %s790_s28  }
   0xf   : > { %p71_p8 = scmp.ne.s32.totalorder %s782_s14, %s778_s13  ;;  %p62_p9 = scmp.eq.s32.totalorder %s61_s6, 0 }
  0x10   : > { %p72_p10 = scmp.eq.s32.totalorder %s786_s15, 0  ;;  %p615_p11 = scmp.lt.s32.totalorder %s786_s15, 2 }
  0x11   : > { %s155_s7 = sand.u32 1, %s786_s15   ;;  %s157_s9 = sand.u32 1, %s782_s14  }
  0x12   : > { %s875_s8 = scalar_select %p62_p9, %s782_s14, %s64_s5  }
  0x13   : > { %p73_p12 = por %p72_p10, %p71_p8  ;;  %s590_s10 = sshll.u32 %s786_s15, 6 }
  0x14   : > { %s560_s11 = sshll.u32 %s157_s9, 6  ;;  %s165_s19 = scalar_lea.hbm %s952_s2, %s590_s10 }
  0x15   : > { %s166_s20 = sshll.u32 %s165_s19, 4  ;;  %s159_s22 = scalar_lea.vmem [#allocation6], %s560_s11  ;;  %s167_s20 = int_to_ptr.hbm [resolvable:$true] %s166_s20 }
  0x16   : > { %s168_s23 = sshll.u32 %s159_s22, 4  ;;  %p884_p13 = pnand %p615_p11, %p73_p12  ;;  %s169_s23 = int_to_ptr.vmem [resolvable:$true] %s168_s23 }
  0x17   : > { %s156_s25 = scalar_lea.sflag [#allocation3], %s155_s7  ;;  %s714_s26 = sshra.s32 %s167_s20, 4  ;;  %s715_s26 = int_to_ptr.hbm [resolvable:$true] %s714_s26 }
  0x18   : > { %s716_s29 = scalar_lea.hbm %s715_s26, 64  ;;  %p718_p2 = pneg %p884_p13 }
  0x19   : > { %p717_p0 = scmp.ne.s32.totalorder %s715_s26, %s716_s29  ;;  %s721_s6 = scalar_lea.hbm %s952_s2, 128 }
  0x1a   : > { %p722_p7 = scmp.lt.s32.totalorder %s715_s26, %s952_s2  ;;  %p723_p8 = scmp.lt.s32.totalorder %s721_s6, %s716_s29 }
  0x1b   : > { %p719_p3 = pnand %p718_p2, %p717_p0 }
  0x1c   : > { %p724_p9 = por %p723_p8, %p722_p7 }
  0x1d   : > { %p720_p6 = pneg %p719_p3 }
  0x1f   : > { %p725_p10 = pnand %p724_p9, %p720_p6 }
  0x21   : > { %728 = shalt.err (!%p725_p10)
}
  0x22   : > { %612 = dma.hbm_to_vmem [thread:$0]  (!%p884_p13), %s167_s20, 1024, %s169_s23, %s156_s25, %s789_s27, %s789_s27, %s790_s28  }
  0x23   : > { %180 = sbr.rel (%p846_p5) target bundleno = 337 (0x151), region = 32 }
  0x28   : > { %761 = dma.done.wait (%p78_p1), [#allocation3], 256  }
  0x29   : > { %763 = vsyncadd (%p78_p1), [#allocation3], 4294967040 }
  0x2a   : > { %765 = dma.done.wait (%p78_p1), [#allocation5], 256  }
  0x2b   : > { %767 = vsyncadd (%p78_p1), [#allocation5], 4294967040  ;;  %s192_s7 = sand.u32 1, %s831_s16   ;;  %s194_s27 = sand.u32 1, %s778_s13  }
  0x2c   : > { %s567_s28 = sshll.u32 %s194_s27, 6  ;;  %s193_s21 = scalar_lea.sflag [#allocation3], %s192_s7 }
  0x2d   : > { %s196_s10 = scalar_lea.vmem [#allocation6], %s567_s28 }
  0x2e   : > { %769 = dma.done.wait (%p839_p4), %s193_s21, 1024  }
  0x2f   : > { %771 = vsyncadd (%p839_p4), %s193_s21, 4294966272  ;;  %v238_v0 = vld [vmem:[#allocation2 + $0x8] sm:$0xff]  ;;  %v237_v1 = vld [vmem:[#allocation2] sm:$0xff]  ;;  %vm239_vm0 = vcmask 130048   ;;  %s568_s17 = sshll.u32 %s831_s16, 2  ;;  %vm456_vm1 = vcmask 72704  }
  0x30   : > { %260 = vmatpush.msra.mxu0 %v238_v0  ;;  %318 = vmatpush.msra.mxu2 %v238_v0  ;;  %v229_v2 = vld [vmem:[%s196_s10] sm:$0xff]  ;;  %v235_v4 = vld [vmem:[%s196_s10 + $0x30] sm:$0xff]  ;;  %v230_v6 = vld [vmem:[%s196_s10 + $0x8] sm:$0xff]  ;;  %p223_p1 = scmp.lt.s32.totalorder %s568_s17, 7  ;;  %vm458_vm2 = vcmask 65536  }
  0x31   : > { %347 = vmatpush.msra.mxu3 %v238_v0  ;;  %289 = vmatpush.msra.mxu1 %v238_v0  ;;  %v233_v3 = vld [vmem:[%s196_s10 + $0x20] sm:$0xff]  ;;  %v231_v5 = vld [vmem:[%s196_s10 + $0x10] sm:$0xff]  ;;  %v234_v7 = vld [vmem:[%s196_s10 + $0x28] sm:$0xff] }
  0x32   : > { %261 = vmatpush.msra.mxu0 %v237_v1  ;;  %319 = vmatpush.msra.mxu2 %v237_v1  ;;  %v236_v8 = vld [vmem:[%s196_s10 + $0x38] sm:$0xff]  ;;  %v356_v16 = vld [vmem:[#allocation4] sm:$0xff]  ;;  %s962_s17 = smov (!%p223_p1, %s568_s17), 7 }
  0x33   : > { %348 = vmatpush.msra.mxu3 %v237_v1  ;;  %571 = vmatmul.msk.f32.vlgmr.msra.gmra.mxu0 %vm239_vm0, %v229_v2  ;;  %v232_v9 = vld [vmem:[%s196_s10 + $0x18] sm:$0xff]  ;;  %s591_s11 = sshll.u32 %s962_s17, 4 }
  0x34   : > { %290 = vmatpush.msra.mxu1 %v237_v1  ;;  %575 = vmatmul.msk.f32.vlgmr.msra.gmra.mxu2 %vm239_vm0, %v233_v3  ;;  %v357_v19 = vld [vmem:[#allocation4 + $0x8] sm:$0x1]  ;;  %s227_s19 = scalar_lea.vmem %s953_s3, %s591_s11 }
  0x35   : > { %577 = vmatmul.msk.f32.vlgmr.msra.gmra.mxu3 %vm239_vm0, %v235_v4  ;;  %573 = vmatmul.msk.f32.vlgmr.msra.gmra.mxu1 %vm239_vm0, %v231_v5 }
  0x3b   : > { %572 = vmatmul.msk.f32.gmra.mxu0 %vm239_vm0, %v230_v6 }
  0x3c   : > { %576 = vmatmul.msk.f32.gmra.mxu2 %vm239_vm0, %v234_v7 }
  0x3d   : > { %578 = vmatmul.msk.f32.gmra.mxu3 %vm239_vm0, %v236_v8  ;;  %574 = vmatmul.msk.f32.gmra.mxu1 %vm239_vm0, %v232_v9 }
  0xb0   : > { %v263_v10 = vpop.f32.mrf.mxu0 }
  0xb2   : > { %v292_v11 = vpop.f32.mrf.mxu1 }
  0xb7   : > { %v321_v12 = vpop.f32.mrf.mxu2 }
  0xb8   : > { %v350_v13 = vpop.f32.mrf.mxu3  ;;  %v266_v14 = vpop.f32.mrf.mxu0 }
  0xb9   : > { %378 = vmatpush.msrb.mxu0 %v266_v14 }
  0xba   : > { %v295_v15 = vpop.f32.mrf.mxu1 }
  0xbb   : > { %401 = vmatpush.msrb.mxu1 %v295_v15  ;;  %379 = vmatpush.msrb.mxu0 %v263_v10 }
  0xbc   : > { %579 = vmatmul.msk.f32.vlgmr.msrb.gmra.mxu0 %vm239_vm0, %v356_v16 }
  0xbd   : > { %402 = vmatpush.msrb.mxu1 %v292_v11 }
  0xbe   : > { %581 = vmatmul.msk.f32.vlgmr.msrb.gmra.mxu1 %vm239_vm0, %v356_v16 }
  0xbf   : > { %v324_v17 = vpop.f32.mrf.mxu2 }
  0xc0   : > { %v353_v18 = vpop.f32.mrf.mxu3  ;;  %424 = vmatpush.msrb.mxu2 %v324_v17 }
  0xc1   : > { %447 = vmatpush.msrb.mxu3 %v353_v18 }
  0xc2   : > { %425 = vmatpush.msrb.mxu2 %v321_v12 }
  0xc3   : > { %448 = vmatpush.msrb.mxu3 %v350_v13  ;;  %583 = vmatmul.msk.f32.vlgmr.msrb.gmra.mxu2 %vm239_vm0, %v356_v16 }
  0xc4   : > { %585 = vmatmul.msk.f32.vlgmr.msrb.gmra.mxu3 %vm239_vm0, %v356_v16  ;;  %580 = vmatmul.msk.f32.gmra.mxu0 %vm239_vm0, %v357_v19 }
  0xc6   : > { %582 = vmatmul.msk.f32.gmra.mxu1 %vm239_vm0, %v357_v19 }
  0xcb   : > { %584 = vmatmul.msk.f32.gmra.mxu2 %vm239_vm0, %v357_v19 }
  0xcc   : > { %586 = vmatmul.msk.f32.gmra.mxu3 %vm239_vm0, %v357_v19 }
 0x139   : > { %v381_v20 = vpop.f32.mrf.mxu0 }
 0x13a   : > { %457 = vst.msk [vmem:[%s227_s19] sm:$0xff] %vm456_vm1, %v381_v20 }
 0x13b   : > { %v404_v21 = vpop.f32.mrf.mxu1 }
 0x13c   : > { %460 = vst.msk [vmem:[%s227_s19 + $0x10] sm:$0xff] %vm456_vm1, %v404_v21 }
 0x141   : > { %v384_v22 = vpop.f32.mrf.mxu0 }
 0x142   : > { %459 = vst.msk [vmem:[%s227_s19 + $0x8] sm:$0x1] %vm458_vm2, %v384_v22 }
 0x143   : > { %v407_v23 = vpop.f32.mrf.mxu1 }
 0x144   : > { %461 = vst.msk [vmem:[%s227_s19 + $0x18] sm:$0x1] %vm458_vm2, %v407_v23 }
 0x146   : > { %v427_v24 = vpop.f32.mrf.mxu2 }
 0x147   : > { %462 = vst.msk [vmem:[%s227_s19 + $0x20] sm:$0xff] %vm456_vm1, %v427_v24  ;;  %v450_v25 = vpop.f32.mrf.mxu3 }
 0x148   : > { %464 = vst.msk [vmem:[%s227_s19 + $0x30] sm:$0xff] %vm456_vm1, %v450_v25 }
 0x14e   : > { %v430_v26 = vpop.f32.mrf.mxu2 }
 0x14f   : > { %463 = vst.msk [vmem:[%s227_s19 + $0x28] sm:$0x1] %vm458_vm2, %v430_v26  ;;  %v453_v27 = vpop.f32.mrf.mxu3 }
 0x150   : > { %465 = vst.msk [vmem:[%s227_s19 + $0x38] sm:$0x1] %vm458_vm2, %v453_v27 }
 0x151 PF: > { %p12_p4 = scmp.ge.s32.totalorder %s864_s4, 4   ;;  %s957_s12 = smov %s778_s13 }
 0x152   : > { %s958_s13 = smov %s782_s14  ;;  %s959_s14 = smov %s875_s8 }
 0x153   : > { %s960_s15 = smov %s864_s4  ;;  %14 = sbr.rel (!%p12_p4) target bundleno = 3 (0x3), region = 79 }
 0x158   :  { %490 = vsyncpa [#allocation3], 1 }
 0x159   :  { %492 = vsyncpa [#allocation3 + $0x1], 1 }
 0x15a   :  { %493 = vsyncpa [#allocation5], 1 }

</bundles_post_ra>
